<compile_context>
chip_gen: v7x
topology: tpu7x:2x2x1
jax: 0.10.0
libtpu: 0.0.40
codegen_flags: <defaults>
</compile_context>

<pallas_src>
import functools

import jax
import jax.numpy as jnp
from jax.experimental import pallas as pl
from jax.experimental.pallas import tpu as pltpu


# ---------------------------------------------------------------------------
# Kernels
# ---------------------------------------------------------------------------
def _fc_relu_resident_kernel(x_ref, w_ref, b_ref, o_ref):
    """Weight-resident path: whole (K, N) weight + (1, N) bias live in VMEM.

    x_ref: (tm, K), w_ref: (K, N), b_ref: (1, N) f32, o_ref: (tm, N)
    """
    acc = jnp.dot(x_ref[...], w_ref[...], preferred_element_type=jnp.float32)
    acc = acc + b_ref[...]                      # bias is float32
    # TODO(synk): swap in other activation_function choices of the PyTorch
    # module here; this instantiation uses ReLU.
    o_ref[...] = jnp.maximum(acc, 0.0).astype(o_ref.dtype)


def _fc_relu_tiled_kernel(x_ref, w_ref, b_ref, o_ref, acc_ref):
    """K-tiled fallback: x (tm, tk), w (tk, tn), bias (1, tn) f32, out (tm, tn)."""
    k = pl.program_id(2)
    partial = jnp.dot(x_ref[...], w_ref[...],
                      preferred_element_type=jnp.float32)

    @pl.when(k == 0)
    def _init():
        # Single store: dot + bias (no separate bias-store-then-add pass).
        acc_ref[...] = partial + b_ref[...]

    @pl.when(k != 0)
    def _accum():
        acc_ref[...] += partial

    @pl.when(k == pl.num_programs(2) - 1)
    def _finalize():
        o_ref[...] = jnp.maximum(acc_ref[...], 0.0).astype(o_ref.dtype)


# ---------------------------------------------------------------------------
# Wrapper
# ---------------------------------------------------------------------------
def _round_up(x, m):
    return ((x + m - 1) // m) * m


def conv_feature_extractor(inputs, weight, bias, *,
                           tm_max=512, tn_max=512, tk_max=1024,
                           out_dtype=None):
    """Pallas equivalent of ConvFeatureExtractor.forward (ReLU activation).

    inputs: (dim_0, dim_1, input_size)
    weight: (output_size, input_size)   -- Conv2d(k=1) weight squeezed
    bias:   (output_size,)
    returns (dim_0, dim_1, output_size)

    For best MXU/HBM throughput on v6e/v7x pass bf16 inputs/weight (the
    accumulator and the bias + ReLU epilogue are always float32); the default
    keeps the input dtype so results match the f32 reference bit-for-bit.
    """
    d0, d1, K = inputs.shape
    N, Kw = weight.shape
    assert Kw == K
    if N == 0:
        # Mirrors the PyTorch module's `output_size == 0` branch.
        return jnp.zeros((0,), dtype=inputs.dtype)

    M = d0 * d1
    out_dtype = inputs.dtype if out_dtype is None else out_dtype
    itemsize = jnp.dtype(inputs.dtype).itemsize

    # One-time parameter transforms (constant-foldable under jit).
    w_kn = jnp.transpose(weight)                      # (K, N): plain contraction
    b2d = bias.astype(jnp.float32).reshape(1, N)      # f32 bias end-to-end

    x2d = inputs.reshape(M, K)

    # ---- M tiling (sublane axis): tm multiple of 8, pad M only if needed ----
    tm = min(tm_max, _round_up(M, 8))
    Mp = _round_up(M, tm)
    if Mp != M:
        x2d = jnp.pad(x2d, ((0, Mp - M), (0, 0)))

    # ---- choose path: weight-resident (1-D grid) vs. K-tiled fallback -------
    weight_bytes = K * N * itemsize
    resident_vmem = (2 * tm * K + K * N + 2 * tm * N) * itemsize + 4 * N
    use_resident = resident_vmem <= (24 << 20)        # leaves ample headroom

    if use_resident:
        grid = (Mp // tm,)
        cost = pl.CostEstimate(
            flops=2 * Mp * K * N,
            transcendentals=0,
            bytes_accessed=(Mp * K + K * N) * itemsize + 4 * N
                           + Mp * N * jnp.dtype(out_dtype).itemsize)
        vmem_limit = int(min(48 << 20, max(32 << 20, 2 * resident_vmem)))

        out2d = pl.pallas_call(
            _fc_relu_resident_kernel,
            out_shape=jax.ShapeDtypeStruct((Mp, N), out_dtype),
            grid=grid,
            in_specs=[
                pl.BlockSpec((tm, K), lambda i: (i, 0)),   # x tile, streamed
                pl.BlockSpec((K, N), lambda i: (0, 0)),    # weight, DMA'd once
                pl.BlockSpec((1, N), lambda i: (0, 0)),    # bias,   DMA'd once
            ],
            out_specs=pl.BlockSpec((tm, N), lambda i: (i, 0)),
            compiler_params=pltpu.CompilerParams(
                # "parallel" so v7x shards the M grid across both TensorCores;
                # no-op on single-TC v5e/v6e.
                dimension_semantics=("parallel",),
                vmem_limit_bytes=vmem_limit),
            cost_estimate=cost,
        )(x2d, w_kn, b2d)
    else:
        # Large-weight fallback: pad K/N to lane-aligned tile multiples.
        tn = min(tn_max, _round_up(N, 128))
        tk = min(tk_max, _round_up(K, 128))
        Np = _round_up(N, tn)
        Kp = _round_up(K, tk)
        if Kp != K:
            x2d = jnp.pad(x2d, ((0, 0), (0, Kp - K)))
        if (Kp, Np) != (K, N):
            w_kn = jnp.pad(w_kn, ((0, Kp - K), (0, Np - N)))
        if Np != N:
            b2d = jnp.pad(b2d, ((0, 0), (0, Np - N)))

        grid = (Mp // tm, Np // tn, Kp // tk)
        tiled_vmem = ((2 * tm * tk + 2 * tk * tn + 2 * tm * tn) * itemsize
                      + tm * tn * 4 + 4 * tn)
        vmem_limit = int(min(48 << 20, max(32 << 20, 2 * tiled_vmem)))
        cost = pl.CostEstimate(
            flops=2 * Mp * Np * Kp,
            transcendentals=0,
            # x re-read Np/tn times, w re-read Mp/tm times, output written once.
            bytes_accessed=(Mp * Kp * (Np // tn) + Np * Kp * (Mp // tm)) * itemsize
                           + 4 * Np
                           + Mp * Np * jnp.dtype(out_dtype).itemsize)

        out2d = pl.pallas_call(
            _fc_relu_tiled_kernel,
            out_shape=jax.ShapeDtypeStruct((Mp, Np), out_dtype),
            grid=grid,
            in_specs=[
                pl.BlockSpec((tm, tk), lambda i, j, k: (i, k)),   # x tile
                pl.BlockSpec((tk, tn), lambda i, j, k: (k, j)),   # w tile (K,N)
                pl.BlockSpec((1, tn), lambda i, j, k: (0, j)),    # bias tile
            ],
            out_specs=pl.BlockSpec((tm, tn), lambda i, j, k: (i, j)),
            scratch_shapes=[pltpu.VMEM((tm, tn), jnp.float32)],
            compiler_params=pltpu.CompilerParams(
                dimension_semantics=("parallel", "parallel", "arbitrary"),
                vmem_limit_bytes=vmem_limit),
            cost_estimate=cost,
        )(x2d, w_kn, b2d)
        if Np != N:
            out2d = out2d[:, :N]

    if Mp != M:
        out2d = out2d[:M]
    return out2d.reshape(d0, d1, N)


# ---------------------------------------------------------------------------
# Self-test
# ---------------------------------------------------------------------------
if __name__ == "__main__":
    # Small, module-consistent shapes: inputs (dim_0=2, dim_1=8, input_size=32),
    # output_size=64.  (At this toy size a fused XLA FC would win; the kernel is
    # structured for the large-M regime where it is HBM-bound.)
    dim_0, dim_1 = 2, 8
    input_size, output_size = 32, 64

    key = jax.random.PRNGKey(0)
    k_x, k_w, k_b = jax.random.split(key, 3)

    x = jax.random.normal(k_x, (dim_0, dim_1, input_size), dtype=jnp.float32)
    # Deterministic synthetic parameters (Conv2d(input_size, output_size, k=1))
    weight = jax.random.normal(k_w, (output_size, input_size),
                               dtype=jnp.float32) * 0.1
    bias = jax.random.normal(k_b, (output_size,), dtype=jnp.float32) * 0.1

    fn = jax.jit(functools.partial(conv_feature_extractor))
    out = jax.block_until_ready(fn(x, weight, bias))

    # Reference check (plain JAX, same math as the PyTorch module with ReLU)
    ref = jnp.maximum(
        jnp.einsum("bti,oi->bto", x, weight) + bias[None, None, :], 0.0)
    assert out.shape == (dim_0, dim_1, output_size)
    assert jnp.allclose(out, ref, atol=1e-5, rtol=1e-5)

    print("KERNEL_OK")
</pallas_src>

<mosaic_0001>
module attributes {stable_mosaic.version = 11 : i64} {
  func.func @_fc_relu_resident_kernel(%arg0: i32, %arg1: memref<16x32xf32, #tpu.memory_space<vmem>>, %arg2: memref<32x64xf32, #tpu.memory_space<vmem>>, %arg3: memref<1x64xf32, #tpu.memory_space<vmem>>, %arg4: memref<16x64xf32, #tpu.memory_space<vmem>>) attributes {dimension_semantics = [#tpu.dimension_semantics<parallel>], iteration_bounds = array<i64: 1>, scalar_prefetch = 0 : i64, scratch_operands = 0 : i64, tpu.core_type = #tpu.core_type<tc>, window_params = [{transform_indices = @transform_0, window_bounds = array<i64: 16, 32>}, {pipeline_mode = #tpu.pipeline_mode<synchronous>, transform_indices = @transform_1, window_bounds = array<i64: 32, 64>}, {pipeline_mode = #tpu.pipeline_mode<synchronous>, transform_indices = @transform_2, window_bounds = array<i64: 1, 64>}, {transform_indices = @transform_3, window_bounds = array<i64: 16, 64>}]} {
    %c0 = arith.constant 0 : index
    %c0_0 = arith.constant 0 : index
    %0 = vector.load %arg1[%c0, %c0_0] : memref<16x32xf32, #tpu.memory_space<vmem>>, vector<16x32xf32>
    %c0_1 = arith.constant 0 : index
    %c0_2 = arith.constant 0 : index
    %1 = vector.load %arg2[%c0_1, %c0_2] : memref<32x64xf32, #tpu.memory_space<vmem>>, vector<32x64xf32>
    %cst = arith.constant dense<0.000000e+00> : vector<16x64xf32>
    %2 = tpu.matmul %0, %1, %cst {dimension_numbers = #tpu.dot_dimension_numbers<[1], [0], [0], [1], [0, 0, 1, 1], [], []>} : vector<16x32xf32>, vector<32x64xf32>, vector<16x64xf32> -> vector<16x64xf32>
    %c0_3 = arith.constant 0 : index
    %c0_4 = arith.constant 0 : index
    %3 = vector.load %arg3[%c0_3, %c0_4] : memref<1x64xf32, #tpu.memory_space<vmem>>, vector<1x64xf32>
    %4 = vector.broadcast %3 : vector<1x64xf32> to vector<16x64xf32>
    %5 = arith.addf %2, %4 : vector<16x64xf32>
    %cst_5 = arith.constant 0.000000e+00 : f32
    %6 = vector.broadcast %cst_5 : f32 to vector<16x64xf32>
    %7 = arith.maximumf %5, %6 : vector<16x64xf32>
    %c0_6 = arith.constant 0 : index
    %c0_7 = arith.constant 0 : index
    %8 = vector.load %arg4[%c0_6, %c0_7] : memref<16x64xf32, #tpu.memory_space<vmem>>, vector<16x64xf32>
    tpu.vector_store %arg4[%c0_6, %c0_7], %7 {strides = array<i32>} : memref<16x64xf32, #tpu.memory_space<vmem>>, vector<16x64xf32>,
    return
  }
  func.func @transform_0(%arg0: i32) -> (i32, i32) {
    %c0_i32 = arith.constant 0 : i32
    %c0_i32_0 = arith.constant 0 : i32
    return %arg0, %c0_i32 : i32, i32
  }
  func.func @transform_1(%arg0: i32) -> (i32, i32) {
    %c0_i32 = arith.constant 0 : i32
    %c0_i32_0 = arith.constant 0 : i32
    %c0_i32_1 = arith.constant 0 : i32
    return %c0_i32, %c0_i32_0 : i32, i32
  }
  func.func @transform_2(%arg0: i32) -> (i32, i32) {
    %c0_i32 = arith.constant 0 : i32
    %c0_i32_0 = arith.constant 0 : i32
    %c0_i32_1 = arith.constant 0 : i32
    return %c0_i32, %c0_i32_0 : i32, i32
  }
  func.func @transform_3(%arg0: i32) -> (i32, i32) {
    %c0_i32 = arith.constant 0 : i32
    %c0_i32_0 = arith.constant 0 : i32
    return %arg0, %c0_i32 : i32, i32
  }
}

</mosaic_0001>

<bundles_post_ra>
// kernel: conv_feature_extractor.1
= control target key start
LH: loop header
LB: loop body
LE: loop exit
PB: predicated region body
PF: predicated region fallthrough
CT: control target
= control target key end

     0   :  { %8 = vsyncpa [#allocation3], 0  ;;  %s339_s0 = inlined_call_operand.hbm [shape: f32[16,32], index: 0, kind: input, shape index: {}]   ;;  %s340_s1 = inlined_call_operand.hbm [shape: f32[32,64], index: 1, kind: input, shape index: {}]   ;;  %s341_s2 = inlined_call_operand.vmem [shape: f32[1,64], index: 2, kind: input, shape index: {}]   ;;  %s342_s3 = inlined_call_operand.hbm [shape: f32[16,64], index: 3, kind: output, shape index: {}]  }
   0x1   :  { %9 = vsyncpa [#allocation6], 0 }
   0x2   :  { %10 = vsyncpa [#allocation4], 0  ;;  %s266_s12 = smov [#allocation2]   ;;  %s194_s16 = scalar_lea.hbm %s339_s0, 256 }
   0x3   :  { %s16_s13 = sshll.u32 %s266_s12, 4  ;;  %p195_p0 = scmp.ne.s32.totalorder %s339_s0, %s194_s16  ;;  %s17_s13 = int_to_ptr.vmem [resolvable:$true] %s16_s13 }
   0x4   :  { %p198_p1 = scmp.lt.u32.totalorder %s194_s16, %s339_s0 }
   0x6   :  { %p200_p2 = pnand %p198_p1, %p195_p0 }
   0x8   :  { %203 = shalt.err (!%p200_p2)
}
   0x9   :  { %s204_s21 = scalar_lea.vmem %s17_s13, 256  ;;  %p209_p4 = scmp.lt.s32.totalorder %s17_s13, %s17_s13 }
   0xa   :  { %p205_p3 = scmp.ne.s32.totalorder %s17_s13, %s204_s21  ;;  %p210_p5 = scmp.lt.s32.totalorder %s204_s21, %s204_s21 }
   0xc   :  { %p211_p6 = por %p210_p5, %p209_p4 }
   0xe   :  { %p212_p7 = pnand %p211_p6, %p205_p3 }
  0x10   :  { %215 = shalt.err (!%p212_p7)
}
  0x11   :  { %s267_s22 = smov 128   ;;  %s268_s23 = smov 8  }
  0x12   :  { %22 = dma.hbm_to_vmem [thread:$0]  %s339_s0, 256, %s17_s13, [#allocation3], %s267_s22, %s267_s22, %s268_s23  }
  0x13   :  { %s269_s26 = smov [#allocation5]   ;;  %s216_s30 = scalar_lea.hbm %s340_s1, 512 }
  0x14   :  { %s28_s27 = sshll.u32 %s269_s26, 4  ;;  %p217_p8 = scmp.ne.s32.totalorder %s340_s1, %s216_s30  ;;  %s29_s27 = int_to_ptr.vmem [resolvable:$true] %s28_s27 }
  0x15   :  { %p220_p9 = scmp.lt.u32.totalorder %s216_s30, %s340_s1 }
  0x17   :  { %p222_p10 = pnand %p220_p9, %p217_p8 }
  0x19   :  { %225 = shalt.err (!%p222_p10)
}
  0x1a   :  { %s226_s8 = scalar_lea.vmem %s29_s27, 512  ;;  %p231_p12 = scmp.lt.s32.totalorder %s29_s27, %s29_s27 }
  0x1b   :  { %p227_p11 = scmp.ne.s32.totalorder %s29_s27, %s226_s8  ;;  %p232_p13 = scmp.lt.s32.totalorder %s226_s8, %s226_s8 }
  0x1d   :  { %p233_p0 = por %p232_p13, %p231_p12 }
  0x1f   :  { %p234_p1 = pnand %p233_p0, %p227_p11 }
  0x21   :  { %237 = shalt.err (!%p234_p1)
}
  0x22   :  { %34 = dma.hbm_to_vmem [thread:$0]  %s340_s1, 512, %s29_s27, [#allocation6], %s267_s22, %s267_s22, %s268_s23  }
  0x23   :  { %260 = dma.done.wait [#allocation3], 256  }
  0x24   :  { %261 = vsyncadd [#allocation3], 4294967040 }
  0x25   :  { %262 = dma.done.wait [#allocation6], 512  }
  0x26   :  { %263 = vsyncadd [#allocation6], 4294966784  ;;  %vm56_vm0 = vcmask 261120   ;;  %v45_v0 = vld [vmem:[#allocation5] sm:$0xff]  ;;  %v46_v1 = vld [vmem:[#allocation5 + $0x8] sm:$0xff]  ;;  %s270_s11 = smov [#allocation7]  }
  0x27   :  { %v47_v2 = vld [vmem:[#allocation5 + $0x10] sm:$0xff]  ;;  %v181_v3 = vpack.c.bf16 %v46_v1, %v45_v0  ;;  %v48_v4 = vld [vmem:[#allocation5 + $0x18] sm:$0xff]  ;;  %s148_s12 = sshll.u32 %s270_s11, 4  ;;  %vm140_vm1 = vcmask 523264   ;;  %s149_s12 = int_to_ptr.vmem [resolvable:$true] %s148_s12 }
  0x28   :  { %v43_v5 = vld [vmem:[#allocation2] sm:$0xff]  ;;  %v185_v6 = vpack.c.bf16 %v48_v4, %v47_v2  ;;  %v44_v7 = vld [vmem:[#allocation2 + $0x8] sm:$0xff]  ;;  %s238_s13 = scalar_lea.vmem %s149_s12, 256  ;;  %p243_p3 = scmp.lt.s32.totalorder %s149_s12, %s149_s12 }
  0x29   :  { %178 = vmatprep.mubr.msk.f32.mxu0 %vm56_vm0, %v43_v5  ;;  %182 = vmatprep.subr.bf16.mxu0 %v181_v3  ;;  %v161_v8 = vld [vmem:[%s341_s2] ss:$0 sm:$0xff]  ;;  %p239_p2 = scmp.ne.s32.totalorder %s149_s12, %s238_s13  ;;  %p244_p4 = scmp.lt.s32.totalorder %s238_s13, %s238_s13 }
  0x2a   :  { %184 = vmatpush3.bf16.msra.mxu0 %v181_v3 }
  0x2b   :  { %186 = vmatprep.subr.bf16.mxu0 %v185_v6  ;;  %p245_p5 = por %p244_p4, %p243_p3 }
  0x2d   :  { %p246_p6 = pnand %p245_p5, %p239_p2 }
  0x2e   :  { %188 = vmatpush3.bf16.msra.mxu0 %v185_v6 }
  0x31   :  { %179 = vmatmul.mubr.msk.f32.vlgmr.msra.gmra.mrb[0].mxu0 %vm56_vm0, %v44_v7 }
 0x104   :  { %v180_v9 = vpop.f32.mrb[0].mxu0 }
 0x105   :  { %v135_v10 = vadd.f32 %v180_v9, %v161_v8  ;;  %v129_v11 = vpop.f32.mrb[1].mxu0 }
 0x106   :  { %v130_v12 = vadd.f32 %v161_v8, %v129_v11 }
 0x107   :  { %v139_v13 = vmax.f32 %v135_v10, 0.0 }
 0x108   :  { %v138_v14 = vmax.f32 %v130_v12, 0.0 }
 0x109   :  { %142 = vst.msk [vmem:[#allocation7 + $0x8] sm:$0xff] %vm140_vm1, %v139_v13 }
 0x10a   :  { %141 = vst.msk [vmem:[#allocation7] sm:$0xff] %vm140_vm1, %v138_v14 }
 0x10b   :  { %249 = shalt.err (!%p246_p6)
}
 0x10c   :  { %s250_s15 = scalar_lea.hbm %s342_s3, 256 }
 0x10d   :  { %p251_p7 = scmp.ne.s32.totalorder %s342_s3, %s250_s15  ;;  %p254_p8 = scmp.lt.u32.totalorder %s250_s15, %s342_s3 }
 0x10f   :  { %p256_p9 = pnand %p254_p8, %p251_p7 }
 0x111   :  { %259 = shalt.err (!%p256_p9)
}
 0x112   :  { %154 = dma.vmem_to_hbm [thread:$0]  %s149_s12, 256, %s342_s3, [#allocation4], %s267_s22, %s267_s22, %s268_s23  }
 0x113   :  { %264 = dma.done.wait [#allocation4], 256  }
 0x114   :  { %265 = vsyncadd [#allocation4], 4294967040 }
 0x115   :  { %158 = vsyncpa [#allocation3], 1 }
 0x116   :  { %159 = vsyncpa [#allocation6], 1 }
 0x117   :  { %160 = vsyncpa [#allocation4], 1 }

</bundles_post_ra>
